<compile_context>
chip_gen: v6e
topology: v6e:2x2x1
jax: 0.10.0
libtpu: 0.0.40
codegen_flags: <defaults>
</compile_context>

<pallas_src>
import functools
import numpy as np

import jax
import jax.numpy as jnp
from jax.experimental import pallas as pl
from jax.experimental.pallas import tpu as pltpu


# --------------------------------------------------------------------------------------
# 3x3 binary dilation: shifted-max with zero padding at the border.  Aligned shapes use
# pltpu.roll (XLU slot); unaligned small shapes fall back to jnp.roll.
# --------------------------------------------------------------------------------------
def _dilate3x3(m):
    H, W = m.shape
    rows = jax.lax.broadcasted_iota(jnp.int32, (H, W), 0)
    cols = jax.lax.broadcasted_iota(jnp.int32, (H, W), 1)
    use_roll = (H % 8 == 0) and (W % 128 == 0)

    def sh(x, d, axis):
        n = x.shape[axis]
        if use_roll:
            r = pltpu.roll(x, shift=d % n, axis=axis)
        else:
            r = jnp.roll(x, d, axis=axis)
        idx = rows if axis == 0 else cols
        if d > 0:
            return jnp.where(idx >= d, r, 0.0)
        return jnp.where(idx < n + d, r, 0.0)

    v = jnp.maximum(m, jnp.maximum(sh(m, 1, 0), sh(m, -1, 0)))
    return jnp.maximum(v, jnp.maximum(sh(v, 1, 1), sh(v, -1, 1)))


# --------------------------------------------------------------------------------------
# Kernel A: palm-mask dilation (tiny per-plane pass; keeps the main preprocess kernel
#           purely elementwise so it can be H-strip tiled without halos).
# --------------------------------------------------------------------------------------
def _palm_dilate_kernel(uv0_ref, palm_o):
    tuv = uv0_ref[0, 0].astype(jnp.int32)                       # (H, W)
    palm = ((tuv == 30) | (tuv == 40)).astype(jnp.float32)
    # TODO(synk): tensor_dilate is defined elsewhere in the original repo; a 3x3 binary
    # dilation with zero padding at the image border is assumed here.
    palm = _dilate3x3(palm)
    palm_o[0, 0] = (palm > 0.0).astype(jnp.int8)


def pallas_palm_dilate(uv0_i8):
    B, _, H, W = uv0_i8.shape
    spec = pl.BlockSpec((1, 1, H, W), lambda b: (b, 0, 0, 0))
    return pl.pallas_call(
        _palm_dilate_kernel,
        out_shape=jax.ShapeDtypeStruct((B, 1, H, W), jnp.int8),
        grid=(B,),
        in_specs=[spec],
        out_specs=spec,
        compiler_params=pltpu.CompilerParams(dimension_semantics=("parallel",)),
    )(uv0_i8)


# --------------------------------------------------------------------------------------
# Kernel B: preprocess_input elementwise mask math, H-strip tiled (B x H//tile_h grid).
# --------------------------------------------------------------------------------------
def _preprocess_kernel(p_ref, pr_ref, img_ref, refimg_ref, palm_ref,
                       real_o, cloth_ref_o, head_o, crm_o, lower_o, *, pad_width):
    p = p_ref[0].astype(jnp.int32)        # (th, W) parsing labels
    pr = pr_ref[0].astype(jnp.int32)      # (th, W) reference parsing labels
    img = img_ref[0]                      # (C, th, W) f32
    rimg = refimg_ref[0]                  # (C, th, W) f32
    palm_b = palm_ref[0, 0] > 0           # (th, W) bool, pre-dilated palm mask

    # Integer-domain comparisons + boolean OR; labels are mutually exclusive so the OR
    # equals the original sum-of-indicators.
    crm_b = (pr == 5) | (pr == 6) | (pr == 7)
    head_b = (p == 1) | (p == 2) | (p == 13)
    lower_b = ((p == 8) | (p == 9) | (p == 12) | (p == 16)
               | (p == 17) | (p == 18) | (p == 19))
    hand_b = (p == 14) | (p == 15)
    hm = (head_b | lower_b | (hand_b & palm_b)).astype(jnp.float32)
    crm = crm_b.astype(jnp.float32)

    th, W = p.shape
    cols = jax.lax.broadcasted_iota(jnp.int32, (th, W), 1)     # column index is global
    sil = ((cols >= pad_width) & (cols < W - pad_width)).astype(jnp.float32)

    real_o[0] = img * sil[None]
    cloth_ref_o[0] = crm[None] * rimg + (1.0 - crm[None])
    head_o[0] = hm[None] * img + (1.0 - hm[None])
    crm_o[0, 0] = crm_b.astype(jnp.int8)
    lower_o[0, 0] = lower_b.astype(jnp.int8)


def _pick_tile_h(H):
    if H <= 128:
        return H
    for t in (128, 64, 32):
        if H % t == 0:
            return t
    return H


def pallas_preprocess(parsing, parsing_ref, image, ref, palm_dil, pad_width):
    B, C, H, W = image.shape
    th = _pick_tile_h(H)
    n_strips = H // th
    kern = functools.partial(_preprocess_kernel, pad_width=pad_width)

    spec_lbl = pl.BlockSpec((1, th, W), lambda b, s: (b, s, 0))
    spec_img = pl.BlockSpec((1, C, th, W), lambda b, s: (b, 0, s, 0))
    spec_1ch = pl.BlockSpec((1, 1, th, W), lambda b, s: (b, 0, s, 0))

    out_shapes = (
        jax.ShapeDtypeStruct((B, C, H, W), jnp.float32),   # real = image * sil
        jax.ShapeDtypeStruct((B, C, H, W), jnp.float32),   # cloth_ref
        jax.ShapeDtypeStruct((B, C, H, W), jnp.float32),   # head
        jax.ShapeDtypeStruct((B, 1, H, W), jnp.int8),      # cloth_ref_mask {0,1}
        jax.ShapeDtypeStruct((B, 1, H, W), jnp.int8),      # lower_mask {0,1}
    )
    return pl.pallas_call(
        kern,
        out_shape=out_shapes,
        grid=(B, n_strips),
        in_specs=[spec_lbl, spec_lbl, spec_img, spec_img, spec_1ch],
        out_specs=(spec_img, spec_img, spec_img, spec_1ch, spec_1ch),
        compiler_params=pltpu.CompilerParams(
            dimension_semantics=("parallel", "parallel")),
    )(parsing, parsing_ref, image, ref, palm_dil)


# --------------------------------------------------------------------------------------
# Kernel C: fused bilinear resize (F.interpolate mode='bilinear', align_corners=False)
#           of the four tensors + fused L1 partial sums.  out = A_h @ x @ A_w^T;
#           fake_image uses the sil-folded awt (awt_sil = diag(sil) @ A_w^T), so the
#           full-res head*sil tensor never hits HBM.  Outputs are packed lane-dense.
# --------------------------------------------------------------------------------------
def _bilinear_matrix(out_size, in_size):
    scale = in_size / out_size
    dst = np.arange(out_size, dtype=np.float64)
    src = (dst + 0.5) * scale - 0.5
    src = np.clip(src, 0.0, in_size - 1)
    lo = np.floor(src).astype(np.int64)
    hi = np.minimum(lo + 1, in_size - 1)
    w_hi = (src - lo).astype(np.float32)
    w_lo = (1.0 - w_hi).astype(np.float32)
    a = np.zeros((out_size, in_size), dtype=np.float32)
    a[np.arange(out_size), lo] += w_lo
    a[np.arange(out_size), hi] += w_hi
    return a


@functools.lru_cache(maxsize=None)
def _resize_mats(out_h, out_w, in_h, in_w, pad_width):
    ah = _bilinear_matrix(out_h, in_h)                              # (out_h, H)
    awt = np.ascontiguousarray(_bilinear_matrix(out_w, in_w).T)     # (W, out_w)
    sil = np.zeros((in_w, 1), dtype=np.float32)
    sil[pad_width:in_w - pad_width] = 1.0
    awt_sil = awt * sil                                             # diag(sil) @ A_w^T
    return ah, awt, awt_sil


def _resize_fused_kernel(ah_ref, awt_ref, awts_ref,
                         head_ref, real_ref, ref_ref, uv_ref,
                         packed_o, l1_o):
    ah = ah_ref[...]        # bf16 (out_h, H)
    awt = awt_ref[...]      # bf16 (W, out_w)
    awts = awts_ref[...]    # bf16 (W, out_w), sil-folded

    def resize(x_ref, m):
        x = x_ref[0, 0].astype(jnp.bfloat16)                             # (H, W)
        tmp = jnp.dot(ah, x, preferred_element_type=jnp.float32)         # (out_h, W)
        return jnp.dot(tmp.astype(jnp.bfloat16), m,
                       preferred_element_type=jnp.float32)               # (out_h, out_w)

    fake = resize(head_ref, awts)      # == resize(head * sil)
    real = resize(real_ref, awt)
    refi = resize(ref_ref, awt)
    uv = resize(uv_ref, awt)

    # Lane-dense packed store: (out_h, 4*out_w) so out_w < 128 avoids masked stores.
    packed_o[0, 0] = jnp.concatenate([fake, real, refi, uv], axis=-1)
    # Fused L1 partial sum for this (b, c) plane.
    l1_o[0, 0] = jnp.sum(jnp.abs(fake - real), keepdims=True)


def resize_fused(head, real, ref, tar_uv, out_h, out_w, pad_width):
    head = head.astype(jnp.float32)
    real = real.astype(jnp.float32)
    ref = ref.astype(jnp.float32)
    tar_uv = tar_uv.astype(jnp.float32)
    B, C, H, W = head.shape

    ah_np, awt_np, awts_np = _resize_mats(out_h, out_w, H, W, pad_width)
    ah = jnp.asarray(ah_np, dtype=jnp.bfloat16)
    awt = jnp.asarray(awt_np, dtype=jnp.bfloat16)
    awts = jnp.asarray(awts_np, dtype=jnp.bfloat16)

    plane = pl.BlockSpec((1, 1, H, W), lambda b, c: (b, c, 0, 0))
    packed_spec = pl.BlockSpec((1, 1, out_h, 4 * out_w), lambda b, c: (b, c, 0, 0))
    l1_spec = pl.BlockSpec((1, 1, 1, 1), lambda b, c: (b, c, 0, 0))
    mat_h = pl.BlockSpec((out_h, H), lambda b, c: (0, 0))
    mat_w = pl.BlockSpec((W, out_w), lambda b, c: (0, 0))

    packed, l1p = pl.pallas_call(
        _resize_fused_kernel,
        out_shape=(jax.ShapeDtypeStruct((B, C, out_h, 4 * out_w), jnp.float32),
                   jax.ShapeDtypeStruct((B, C, 1, 1), jnp.float32)),
        grid=(B, C),
        in_specs=[mat_h, mat_w, mat_w, plane, plane, plane, plane],
        out_specs=(packed_spec, l1_spec),
        compiler_params=pltpu.CompilerParams(
            dimension_semantics=("parallel", "parallel")),
    )(ah, awt, awts, head, real, ref, tar_uv)

    ow = out_w
    fake = packed[..., 0 * ow:1 * ow]
    real_r = packed[..., 1 * ow:2 * ow]
    ref_r = packed[..., 2 * ow:3 * ow]
    uv_r = packed[..., 3 * ow:4 * ow]
    return fake, real_r, ref_r, uv_r, l1p


# --------------------------------------------------------------------------------------
# Model wrapper mirroring StyleGAN2TryonModel's forward (mode='generate') data path.
# --------------------------------------------------------------------------------------
class StyleGAN2TryonPallasModel:
    def __init__(self, img_size=64):
        # Original module hardcodes img_size=512; scaled down for small test shapes.
        self.img_size = img_size

    @staticmethod
    def _pad_width(W):
        # Original: pad_width = (512 - 320) // 2 at W == 512; ratio-preserved here.
        return (W - (W * 320) // 512) // 2

    def preprocess_input(self, data):
        parsing = data['parsing_array'].astype(jnp.int8)          # labels < 32
        parsing_ref = data['parsing_ref_array'].astype(jnp.int8)
        image = data['image'].astype(jnp.float32)                 # (B, 3, H, W)
        ref = data['ref'].astype(jnp.float32)
        src_uv = data['source_densepose'].astype(jnp.float32)
        tar_uv = data['target_densepose'].astype(jnp.float32)
        # Only densepose channel 0 is used for the palm mask; ship it as int8.
        tar_uv0 = data['target_densepose'][:, :1].astype(jnp.int8)
        B, C, H, W = image.shape
        pad_width = self._pad_width(W)

        palm_dil = pallas_palm_dilate(tar_uv0)                    # (B,1,H,W) int8

        real, cloth_ref, head, cloth_ref_mask, lower_mask = pallas_preprocess(
            parsing, parsing_ref, image, ref, palm_dil, pad_width)

        # sil is batch-invariant (centered band of ones along W) -> built once outside.
        cols = jnp.arange(W)
        sil_row = ((cols >= pad_width) & (cols < W - pad_width)).astype(jnp.float32)
        sil = jnp.broadcast_to(sil_row[None, None, None, :], (B, 1, H, W))

        return {'real': real, 'ref': ref, 'cloth_ref': cloth_ref,
                'cloth_ref_mask': cloth_ref_mask,   # int8 {0,1} (float in torch original)
                'head': head, 'src_uv': src_uv, 'tar_uv': tar_uv, 'sil': sil,
                'lower_mask': lower_mask}

    def generate_fake(self, data_unpack):
        # TODO(synk): net_corr (GlobalHDCorrespondence) and netG/netG_ema are external
        # checkpointed networks with no definition in this module; resize(head * sil)
        # stands in for netG(...) * sil, with the sil column mask folded into awt_sil.
        s = self.img_size
        W = data_unpack['head'].shape[-1]
        fake, real, refi, uv, l1p = resize_fused(
            data_unpack['head'], data_unpack['real'], data_unpack['ref'],
            data_unpack['tar_uv'], s, s, self._pad_width(W))
        return {'fake_image': fake, 'real': real, 'ref': refi, 'tar_uv': uv,
                '_l1_partials': l1p}

    def compute_generator_loss(self, data_unpack):
        generate_out = self.generate_fake(data_unpack)
        G_losses = {}
        # TODO(synk): G_losses['g'] (softplus of netD logits) and G_losses['vgg']
        # require the external discriminator / pretrained VGG networks.
        B, C, oh, ow = generate_out['fake_image'].shape
        # L1 computed between the resized fake and resized real (fused in the resize
        # kernel); identical to the original when img_size == input resolution.
        G_losses['l1'] = jnp.sum(generate_out['_l1_partials']) / float(B * C * oh * ow)
        return G_losses, generate_out

    def forward(self, data, mode='generate'):
        data_unpack = self.preprocess_input(data)
        if mode == 'generate':
            loss, generated_out = self.compute_generator_loss(data_unpack)
        else:
            # TODO(synk): 'discriminate' / 'r1_reg' modes need the external netD.
            raise Exception('Mode should be generate!')
        out = {k: generated_out[k] for k in ('fake_image', 'real', 'ref', 'tar_uv')}
        return loss, out


# --------------------------------------------------------------------------------------
if __name__ == "__main__":
    key = jax.random.PRNGKey(0)
    B, C, H, W = 2, 3, 128, 128          # lane/sublane-aligned so the roll path is used
    OUT = 64
    ks = jax.random.split(key, 6)
    parsing = jax.random.randint(ks[0], (B, H, W), 0, 20, dtype=jnp.int32)
    parsing_ref = jax.random.randint(ks[1], (B, H, W), 0, 20, dtype=jnp.int32)
    image = jax.random.uniform(ks[2], (B, C, H, W), jnp.float32, -1.0, 1.0)
    ref = jax.random.uniform(ks[3], (B, C, H, W), jnp.float32, -1.0, 1.0)
    src_uv = jax.random.randint(ks[4], (B, C, H, W), 0, 41).astype(jnp.float32)
    tar_uv = jax.random.randint(ks[5], (B, C, H, W), 0, 41).astype(jnp.float32)

    data = {'parsing_array': parsing, 'parsing_ref_array': parsing_ref,
            'image': image, 'ref': ref,
            'source_densepose': src_uv, 'target_densepose': tar_uv}

    model = StyleGAN2TryonPallasModel(img_size=OUT)

    # ---- preprocess correctness checks vs numpy reference -----------------------------
    du = model.preprocess_input(data)
    jax.block_until_ready(du)

    pnp = np.asarray(parsing)
    prnp = np.asarray(parsing_ref)
    imnp = np.asarray(image)
    rfnp = np.asarray(ref)
    tnp = np.asarray(tar_uv)[:, 0]

    pad_width = (W - (W * 320) // 512) // 2
    sil_row_np = np.zeros((W,), np.float32)
    sil_row_np[pad_width:W - pad_width] = 1.0
    np.testing.assert_allclose(np.asarray(du['real']),
                               imnp * sil_row_np[None, None, None, :],
                               rtol=1e-6, atol=1e-6)

    crm_np = np.isin(prnp, [5, 6, 7]).astype(np.float32)[:, None]
    np.testing.assert_allclose(np.asarray(du['cloth_ref']),
                               crm_np * rfnp + (1.0 - crm_np), rtol=1e-6, atol=1e-6)

    palm_np = ((tnp == 30) | (tnp == 40)).astype(np.float32)
    padp = np.pad(palm_np, ((0, 0), (1, 1), (1, 1)))
    dil = np.zeros_like(palm_np)
    for dy in range(3):
        for dx in range(3):
            dil = np.maximum(dil, padp[:, dy:dy + H, dx:dx + W])
    hand_np = np.isin(pnp, [14, 15])
    head_np = np.isin(pnp, [1, 2, 13])
    lower_np = np.isin(pnp, [8, 9, 12, 16, 17, 18, 19])
    hm_np = (head_np | lower_np | (hand_np & (dil > 0))).astype(np.float32)[:, None]
    np.testing.assert_allclose(np.asarray(du['head']),
                               hm_np * imnp + (1.0 - hm_np), rtol=1e-6, atol=1e-6)
    np.testing.assert_array_equal(np.asarray(du['lower_mask'])[:, 0],
                                  lower_np.astype(np.int8))
    np.testing.assert_array_equal(np.asarray(du['cloth_ref_mask'])[:, 0],
                                  np.isin(prnp, [5, 6, 7]).astype(np.int8))

    # ---- full forward ------------------------------------------------------------------
    losses, out = model.forward(data, mode='generate')
    jax.block_until_ready((losses, out))

    assert out['fake_image'].shape == (B, C, OUT, OUT)
    assert out['real'].shape == (B, C, OUT, OUT)
    assert out['ref'].shape == (B, C, OUT, OUT)
    assert out['tar_uv'].shape == (B, C, OUT, OUT)

    # Fused L1 partials must reproduce mean|fake - real| of the kernel outputs.
    exp_l1 = np.mean(np.abs(np.asarray(out['fake_image'], np.float64)
                            - np.asarray(out['real'], np.float64)))
    np.testing.assert_allclose(np.asarray(losses['l1']), exp_l1, rtol=1e-4, atol=1e-6)

    # Resized fake must match a bilinear reference of head*sil within bf16 tolerance.
    ah_np, awt_np, awts_np = _resize_mats(OUT, OUT, H, W, pad_width)
    exp_fake = np.einsum('oh,bchw,wp->bcop', ah_np, np.asarray(du['head']), awts_np)
    np.testing.assert_allclose(np.asarray(out['fake_image']), exp_fake,
                               rtol=0, atol=3e-2)

    print("KERNEL_OK")
</pallas_src>

<mosaic_0001>
module attributes {stable_mosaic.version = 11 : i64} {
  func.func @_palm_dilate_kernel(%arg0: i32, %arg1: memref<1x1x128x128xi8, #tpu.memory_space<vmem>>, %arg2: memref<1x1x128x128xi8, #tpu.memory_space<vmem>>) attributes {dimension_semantics = [#tpu.dimension_semantics<parallel>], iteration_bounds = array<i64: 2>, scalar_prefetch = 0 : i64, scratch_operands = 0 : i64, tpu.core_type = #tpu.core_type<tc>, window_params = [{transform_indices = @transform_0, window_bounds = array<i64: 1, 1, 128, 128>}, {transform_indices = @transform_1, window_bounds = array<i64: 1, 1, 128, 128>}]} {
    %c0 = arith.constant 0 : index
    %c0_0 = arith.constant 0 : index
    %c0_1 = arith.constant 0 : index
    %c0_2 = arith.constant 0 : index
    %0 = vector.load %arg1[%c0, %c0_0, %c0_1, %c0_2] : memref<1x1x128x128xi8, #tpu.memory_space<vmem>>, vector<1x1x128x128xi8>
    %1 = vector.shape_cast %0 : vector<1x1x128x128xi8> to vector<128x128xi8>
    %2 = arith.extsi %1 : vector<128x128xi8> to vector<128x128xi32>
    %c30_i32 = arith.constant 30 : i32
    %3 = vector.broadcast %c30_i32 : i32 to vector<128x128xi32>
    %4 = arith.cmpi eq, %2, %3 : vector<128x128xi32>
    %c40_i32 = arith.constant 40 : i32
    %5 = vector.broadcast %c40_i32 : i32 to vector<128x128xi32>
    %6 = arith.cmpi eq, %2, %5 : vector<128x128xi32>
    %7 = arith.ori %4, %6 : vector<128x128xi1>
    %8 = arith.extui %7 : vector<128x128xi1> to vector<128x128xi32>
    %9 = arith.sitofp %8 : vector<128x128xi32> to vector<128x128xf32>
    %10 = tpu.iota {dimensions = array<i32: 0>} : vector<128x128xi32>
    %11 = tpu.iota {dimensions = array<i32: 1>} : vector<128x128xi32>
    %c1_i32 = arith.constant 1 : i32
    %12 = tpu.dynamic_rotate %9 by %c1_i32 dim 0 : vector<128x128xf32>, i32 -> vector<128x128xf32>
    %c1_i32_3 = arith.constant 1 : i32
    %13 = vector.broadcast %c1_i32_3 : i32 to vector<128x128xi32>
    %14 = arith.cmpi sge, %10, %13 : vector<128x128xi32>
    %cst = arith.constant 0.000000e+00 : f32
    %15 = vector.broadcast %cst : f32 to vector<128x128xf32>
    %16 = arith.select %14, %12, %15 : vector<128x128xi1>, vector<128x128xf32>
    %c127_i32 = arith.constant 127 : i32
    %17 = tpu.dynamic_rotate %9 by %c127_i32 dim 0 : vector<128x128xf32>, i32 -> vector<128x128xf32>
    %c127_i32_4 = arith.constant 127 : i32
    %18 = vector.broadcast %c127_i32_4 : i32 to vector<128x128xi32>
    %19 = arith.cmpi slt, %10, %18 : vector<128x128xi32>
    %cst_5 = arith.constant 0.000000e+00 : f32
    %20 = vector.broadcast %cst_5 : f32 to vector<128x128xf32>
    %21 = arith.select %19, %17, %20 : vector<128x128xi1>, vector<128x128xf32>
    %22 = arith.maximumf %16, %21 : vector<128x128xf32>
    %23 = arith.maximumf %9, %22 : vector<128x128xf32>
    %c1_i32_6 = arith.constant 1 : i32
    %24 = tpu.dynamic_rotate %23 by %c1_i32_6 dim 1 : vector<128x128xf32>, i32 -> vector<128x128xf32>
    %c1_i32_7 = arith.constant 1 : i32
    %25 = vector.broadcast %c1_i32_7 : i32 to vector<128x128xi32>
    %26 = arith.cmpi sge, %11, %25 : vector<128x128xi32>
    %cst_8 = arith.constant 0.000000e+00 : f32
    %27 = vector.broadcast %cst_8 : f32 to vector<128x128xf32>
    %28 = arith.select %26, %24, %27 : vector<128x128xi1>, vector<128x128xf32>
    %c127_i32_9 = arith.constant 127 : i32
    %29 = tpu.dynamic_rotate %23 by %c127_i32_9 dim 1 : vector<128x128xf32>, i32 -> vector<128x128xf32>
    %c127_i32_10 = arith.constant 127 : i32
    %30 = vector.broadcast %c127_i32_10 : i32 to vector<128x128xi32>
    %31 = arith.cmpi slt, %11, %30 : vector<128x128xi32>
    %cst_11 = arith.constant 0.000000e+00 : f32
    %32 = vector.broadcast %cst_11 : f32 to vector<128x128xf32>
    %33 = arith.select %31, %29, %32 : vector<128x128xi1>, vector<128x128xf32>
    %34 = arith.maximumf %28, %33 : vector<128x128xf32>
    %35 = arith.maximumf %23, %34 : vector<128x128xf32>
    %cst_12 = arith.constant 0.000000e+00 : f32
    %36 = vector.broadcast %cst_12 : f32 to vector<128x128xf32>
    %37 = arith.cmpf ogt, %35, %36 : vector<128x128xf32>
    %38 = arith.extui %37 : vector<128x128xi1> to vector<128x128xi8>
    %c0_13 = arith.constant 0 : index
    %c0_14 = arith.constant 0 : index
    %c0_15 = arith.constant 0 : index
    %c0_16 = arith.constant 0 : index
    %39 = vector.load %arg2[%c0_13, %c0_14, %c0_15, %c0_16] : memref<1x1x128x128xi8, #tpu.memory_space<vmem>>, vector<1x1x128x128xi8>
    %40 = vector.shape_cast %39 : vector<1x1x128x128xi8> to vector<128x128xi8>
    %41 = vector.shape_cast %38 : vector<128x128xi8> to vector<1x1x128x128xi8>
    tpu.vector_store %arg2[%c0_13, %c0_14, %c0_15, %c0_16], %41 {strides = array<i32>} : memref<1x1x128x128xi8, #tpu.memory_space<vmem>>, vector<1x1x128x128xi8>,
    return
  }
  func.func @transform_0(%arg0: i32) -> (i32, i32, i32, i32) {
    %c0_i32 = arith.constant 0 : i32
    %c0_i32_0 = arith.constant 0 : i32
    %c0_i32_1 = arith.constant 0 : i32
    %c0_i32_2 = arith.constant 0 : i32
    return %arg0, %c0_i32, %c0_i32_0, %c0_i32_1 : i32, i32, i32, i32
  }
  func.func @transform_1(%arg0: i32) -> (i32, i32, i32, i32) {
    %c0_i32 = arith.constant 0 : i32
    %c0_i32_0 = arith.constant 0 : i32
    %c0_i32_1 = arith.constant 0 : i32
    %c0_i32_2 = arith.constant 0 : i32
    return %arg0, %c0_i32, %c0_i32_0, %c0_i32_1 : i32, i32, i32, i32
  }
}

</mosaic_0001>

<bundles_post_ra>
// kernel: tpu_custom_call.1
= control target key start
LH: loop header
LB: loop body
LE: loop exit
PB: predicated region body
PF: predicated region fallthrough
CT: control target
= control target key end

     0   :  { %6 = vsyncpa [#allocation3], 0  ;;  %s1555_s0 = inlined_call_operand.hbm [shape: s8[2,1,128,128], index: 0, kind: input, shape index: {}]   ;;  %s1556_s1 = inlined_call_operand.hbm [shape: s8[2,1,128,128], index: 1, kind: output, shape index: {}]  }
   0x1   :  { %8 = vsyncpa [#allocation3 + $0x1], 0 }
   0x2   :  { %9 = vsyncpa [#allocation4], 0 }
   0x3   :  { %11 = vsyncpa [#allocation4 + $0x1], 0  ;;  %s951_s6 = smov 0   ;;  %s953_s7 = smov 0  }
   0x4   :  { %s955_s8 = smov 0   ;;  %s957_s9 = smov 0  }
   0x5 LB: > { %s972_s10 = sadd.s32 4294967295, %s929_s9   ;;  %s671_s11 = sadd.s32 4294967294, %s929_s9   ;;  %s929_s9 = sphi %s957_s9, %s1627_s9   ;;  %s925_s8 = sphi %s955_s8, %s1626_s8   ;;  %s921_s7 = sphi %s953_s7, %s1625_s7   ;;  %s917_s6 = sphi %s951_s6, %s1624_s6  }
   0x6   : > { %s976_s12 = sadd.s32 1, %s929_s9   ;;  %s24_s13 = sadd.s32 1, %s925_s8 }
   0x7   : > { %s21_s14 = ssub.s32 %s929_s9, %s976_s12  ;;  %p31_p0 = scmp.ne.s32.totalorder %s925_s8, %s921_s7 }
   0x8   : > { %p22_p1 = scmp.eq.s32.totalorder %s21_s14, 0  ;;  %p32_p2 = scmp.eq.s32.totalorder %s929_s9, 0 }
   0x9   : > { %p37_p3 = scmp.ne.s32.totalorder %s921_s7, %s917_s6  ;;  %p38_p4 = scmp.eq.s32.totalorder %s972_s10, 0 }
   0xa   : > { %s988_s15 = scalar_select %p22_p1, %s925_s8, %s24_s13  }
   0xb   : > { %p990_p5 = por %p32_p2, %p31_p0  ;;  %p994_p6 = por %p38_p4, %p37_p3 }
   0xc   : > { %p61_p7 = scmp.eq.s32.totalorder %s972_s10, 1  ;;  %p67_p8 = scmp.eq.s32.totalorder %s671_s11, 1 }
   0xd   : > { %s1560_s17 = scalar_select %p994_p6, 1, 0 }
   0xe   : > { %p715_p10 = scmp.lt.s32.totalorder %s929_s9, 2  ;;  %p1001_p11 = por %p61_p7, %p31_p0 }
   0xf   : > { %p1005_p12 = por %p67_p8, %p37_p3  ;;  %s87_s20 = sand.u32 1, %s925_s8  }
  0x10   : > { %s1561_s18 = scalar_select %p1001_p11, 1, 0 }
  0x11   : > { %s1562_s19 = scalar_select %p1005_p12, 1, 0 }
  0x12   : > { %s701_s21 = sshll.u32 %s929_s9, 9  ;;  %s674_s22 = sshll.u32 %s87_s20, 5 }
  0x13   : > { %s1014_s25 = scalar_lea.hbm %s1555_s0, %s701_s21  ;;  %s91_s26 = scalar_lea.vmem [#allocation2], %s674_s22 }
  0x14   : > { %s98_s27 = sshll.u32 %s91_s26, 4  ;;  %p1018_p13 = pnand %p715_p10, %p990_p5  ;;  %s1022_s27 = int_to_ptr.vmem [resolvable:$true] %s98_s27 }
  0x15   : > { %s1024_s29 = scalar_lea.sflag [#allocation3], %s87_s20  ;;  %s837_s30 = scalar_lea.hbm %s1014_s25, 512 }
  0x16   : > { %p838_p0 = scmp.ne.s32.totalorder %s1014_s25, %s837_s30  ;;  %p839_p1 = pneg %p1018_p13 }
  0x17   : > { %s842_s4 = scalar_lea.hbm %s1555_s0, 1024  ;;  %p843_p4 = scmp.lt.s32.totalorder %s1014_s25, %s1555_s0 }
  0x18   : > { %p840_p2 = pnand %p839_p1, %p838_p0  ;;  %p844_p5 = scmp.lt.s32.totalorder %s842_s4, %s837_s30 }
  0x1a   : > { %p841_p3 = pneg %p840_p2  ;;  %p845_p7 = por %p844_p5, %p843_p4 }
  0x1c   : > { %p846_p8 = pnand %p845_p7, %p841_p3 }
  0x1e   : > { %849 = shalt.err (!%p846_p8)
}
  0x1f   : > { %s850_s13 = scalar_lea.vmem %s1022_s27, 512  ;;  %s931_s14 = smov [#allocation2]  }
  0x20   : > { %p851_p10 = scmp.ne.s32.totalorder %s1022_s27, %s850_s13  ;;  %s855_s16 = sshll.u32 %s931_s14, 4  ;;  %s856_s16 = int_to_ptr.vmem [resolvable:$false] %s855_s16 }
  0x21   : > { %s857_s20 = scalar_lea.vmem %s856_s16, 1024  ;;  %p858_p2 = scmp.lt.s32.totalorder %s1022_s27, %s856_s16 }
  0x22   : > { %p853_p9 = pnand %p851_p10, %p839_p1  ;;  %p859_p12 = scmp.lt.s32.totalorder %s857_s20, %s850_s13 }
  0x24   : > { %p854_p0 = pneg %p853_p9  ;;  %p860_p11 = por %p859_p12, %p858_p2 }
  0x26   : > { %p861_p6 = pnand %p860_p11, %p854_p0 }
  0x28   : > { %864 = shalt.err (!%p861_p6)
}
  0x29   : > { %s932_s21 = smov 128   ;;  %s933_s22 = smov 8  }
  0x2a   : > { %710 = dma.hbm_to_vmem [thread:$0]  (!%p1018_p13), %s1014_s25, 512, %s1022_s27, %s1024_s29, %s932_s21, %s932_s21, %s933_s22  }
  0x2b   : > { %p677_p9 = scmp.ge.s32.totalorder %s929_s9, 1  ;;  %p106_p1 = scmp.lt.s32.totalorder %s929_s9, 3 }
  0x2d   : > { %p107_p3 = pnand %p677_p9, %p106_p1 }
  0x2e   : > { %s1048_s23 = sand.u32 (!%p107_p3), 1, %s921_s7   ;;  %p1564_p6 = scmp.ne.s32.totalorder (!%p107_p3), %s1560_s17, 0 }
  0x2f   : > { %110 = sbr.rel (%p107_p3) target bundleno = 257 (0x101), region = 24  ;;  %s678_s24 = sshll.u32 (!%p107_p3), %s1048_s23, 5 }
  0x30   : > { %s113_s26 = scalar_lea.sflag (!%p107_p3), [#allocation3], %s1048_s23  ;;  %s1054_s30 = scalar_lea.vmem (!%p107_p3), [#allocation2], %s678_s24 }
  0x34   : > { %908 = dma.done.wait (%p1564_p6), %s113_s26, 512  }
  0x35   : > { %910 = vsyncadd (%p1564_p6), %s113_s26, 4294966784  ;;  %v237_v0 = vlaneseq  ;;  %v1064_v2 = vld [vmem:[%s1054_s30] sm:$0xff]  ;;  %v138_v3 = vld [vmem:[%s1054_s30 + $0x8] sm:$0xff]  ;;  %v934_v24 = vmov 0.0   ;;  %s935_s17 = smov 1   ;;  %s936_s25 = smov 127  }
  0x36   : > { %v1070_v4 = vld [vmem:[%s1054_s30 + $0x10] sm:$0xff]  ;;  %v144_v5 = vunpack.c.3.s8 %v1064_v2  ;;  %v145_v6 = vunpack.c.0.s8 %v138_v3  ;;  %v146_v7 = vunpack.c.1.s8 %v138_v3  ;;  %v147_v8 = vunpack.c.2.s8 %v138_v3  ;;  %v1228_v13 = vld [vmem:[%s1054_s30 + $0x18] sm:$0xff]  ;;  %s1438_s27 = scalar_lea.vmem [#allocation5], %s678_s24  ;;  %s702_s28 = sshll.u32 %s972_s10, 9 }
  0x37   : > { %v1061_v1 = vshrl.u32 %v237_v0, 7  ;;  %v142_v9 = vunpack.c.1.s8 %v1064_v2  ;;  %v143_v10 = vunpack.c.2.s8 %v1064_v2  ;;  %v148_v11 = vunpack.c.3.s8 %v138_v3  ;;  %s598_s29 = sshll.u32 %s1438_s27, 4  ;;  %s1508_s4 = scalar_lea.hbm %s1556_s1, %s702_s28  ;;  %s1510_s29 = int_to_ptr.vmem [resolvable:$true] %s598_s29 }
  0x38   : > { %v149_v12 = vunpack.c.0.s8 %v1070_v4  ;;  %vm1076_vm2 = vcmp.eq.s32.totalorder %v144_v5, 30  ;;  %vm1080_vm3 = vcmp.eq.s32.totalorder %v145_v6, 30  ;;  %vm1084_vm4 = vcmp.eq.s32.totalorder %v146_v7, 30  ;;  %s585_s10 = scalar_lea.sflag [#allocation4], %s1048_s23  ;;  %s865_s5 = scalar_lea.vmem %s1510_s29, 512 }
  0x39   : > { %vm272_vm0 = vcmp.lt.s32.totalorder %v1061_v1, 1  ;;  %vm1088_vm5 = vcmp.eq.s32.totalorder %v147_v8, 30  ;;  %vm176_vm6 = vcmp.eq.s32.totalorder %v144_v5, 40  ;;  %vm1092_vm7 = vcmp.eq.s32.totalorder %v145_v6, 40  ;;  %p866_p11 = scmp.ne.s32.totalorder %s1510_s29, %s865_s5  ;;  %p1621_p12 = scmp.ne.s32.totalorder %s1561_s18, 0 }
  0x3a   : > { %vm1096_vm8 = vcmp.eq.s32.totalorder %v146_v7, 40  ;;  %vm1100_vm9 = vcmp.eq.s32.totalorder %v147_v8, 40  ;;  %vm192_vm10 = vmor %vm1076_vm2, %vm176_vm6  ;;  %vm1106_vm11 = vcmp.eq.s32.totalorder %v142_v9, 30  ;;  %vm1110_vm12 = vcmp.eq.s32.totalorder %v143_v10, 30  ;;  %s938_s11 = smov [#allocation5]  }
  0x3b   : > { %vm1114_vm13 = vcmp.eq.s32.totalorder %v142_v9, 40  ;;  %vm1118_vm14 = vcmp.eq.s32.totalorder %v143_v10, 40  ;;  %vm193_vm15 = vmor %vm1080_vm3, %vm1092_vm7  ;;  %v683_v25 = vsel %vm192_vm10, 1.0, %v934_v24  ;;  %vm1127_vm2 = vcmp.eq.s32.totalorder %v148_v11, 30  ;;  %p867_p13 = pnand %p866_p11, %p1621_p12  ;;  %s869_s13 = sshll.u32 %s938_s11, 4  ;;  %s870_s13 = int_to_ptr.vmem [resolvable:$false] %s869_s13 }
  0x3c   : > { %vm1131_vm6 = vcmp.eq.s32.totalorder %v149_v12, 30  ;;  %vm1135_vm1 = vcmp.eq.s32.totalorder %v148_v11, 40  ;;  %vm194_vm3 = vmor %vm1084_vm4, %vm1096_vm8  ;;  %v684_v29 = vsel %vm193_vm15, 1.0, %v934_v24  ;;  %v259_v30 = vrot.slane %v683_v25, 7  ;;  %s871_s14 = scalar_lea.vmem %s870_s13, 1024  ;;  %p872_p5 = scmp.lt.s32.totalorder %s1510_s29, %s870_s13 }
  0x3d   : > { %v324_v31 = vrot.slane %v683_v25, 1  ;;  %vm1144_vm7 = vcmp.eq.s32.totalorder %v149_v12, 40  ;;  %vm195_vm10 = vmor %vm1088_vm5, %vm1100_vm9  ;;  %v685_v33 = vsel %vm194_vm3, 1.0, %v934_v24  ;;  %v260_v34 = vrot.slane %v684_v29, 7  ;;  %p868_p4 = pneg %p867_p13  ;;  %p873_p7 = scmp.lt.s32.totalorder %s871_s14, %s865_s5 }
  0x3e   : > { %v325_v35 = vrot.slane %v684_v29, 1  ;;  %v150_v36 = vunpack.c.1.s8 %v1070_v4  ;;  %v686_v37 = vsel %vm195_vm10, 1.0, %v934_v24  ;;  %v261_v38 = vrot.slane %v685_v33, 7  ;;  %vm190_vm4 = vmor %vm1106_vm11, %vm1114_vm13 }
  0x3f   : > { %v326_v39 = vrot.slane %v685_v33, 1  ;;  %v151_v40 = vunpack.c.2.s8 %v1070_v4  ;;  %v284_v41 = vsel %vm272_vm0, %v259_v30, %v260_v34  ;;  %v327_v42 = vrot.slane %v686_v37, 1  ;;  %vm191_vm5 = vmor %vm1110_vm12, %vm1118_vm14  ;;  %p874_p8 = por %p873_p7, %p872_p5 }
  0x40   : > { %v1167_v43 = vsel %vm190_vm4, 1.0, %v934_v24  ;;  %vm1595_vm8 = vcmp.lt.s32.totalorder %v1061_v1, 7  ;;  %v283_v45 = vsel %vm272_vm0, %v260_v34, %v261_v38  ;;  %v1176_v47 = vsel %vm191_vm5, 1.0, %v934_v24  ;;  %vm196_vm11 = vmor %vm1127_vm2, %vm1135_vm1 }
  0x41   : > { %v349_v44 = vsel %vm1595_vm8, %v324_v31, %v325_v35  ;;  %vm1596_vm9 = vmmov %vm1595_vm8  ;;  %v257_v48 = vrot.slane %v1167_v43, 7  ;;  %v258_v51 = vrot.slane %v1176_v47, 7  ;;  %v323_v52 = vrot.slane %v1176_v47, 1  ;;  %p875_p10 = pnand %p874_p8, %p868_p4 }
  0x42   : > { %v348_v46 = vsel %vm1596_vm9, %v325_v35, %v326_v39  ;;  %vm1597_vm12 = vmmov %vm1595_vm8  ;;  %v687_v54 = vsel %vm196_vm11, 1.0, %v934_v24  ;;  %v262_v56 = vrot.slane %v686_v37, 7  ;;  %vm1212_vm14 = vcmp.eq.s32.totalorder %v150_v36, 30 }
  0x43   : > { %v347_v49 = vsel %vm1597_vm12, %v326_v39, %v327_v42  ;;  %v390_v50 = vmax.f32 %v284_v41, %v348_v46  ;;  %vm197_vm13 = vmor %vm1131_vm6, %vm1144_vm7  ;;  %v285_v58 = vsel %vm272_vm0, %v258_v51, %v259_v30  ;;  %v286_v59 = vsel %vm272_vm0, %v257_v48, %v258_v51 }
  0x44   : > { %v391_v53 = vmax.f32 %v283_v45, %v347_v49  ;;  %v1193_v55 = vsel %vm197_vm13, 1.0, %v934_v24  ;;  %vm1598_vm1 = vmmov %vm1595_vm8  ;;  %v389_v63 = vmax.f32 %v285_v58, %v349_v44  ;;  %v263_v3 = vrot.slane %v687_v54, 7 }
  0x45   : > { %v1195_v57 = vmax.f32 %v684_v29, %v390_v50  ;;  %v350_v60 = vsel %vm1598_vm1, %v323_v52, %v324_v31  ;;  %v282_v5 = vsel %vm272_vm0, %v261_v38, %v262_v56  ;;  %v328_v6 = vrot.slane %v687_v54, 1  ;;  %vm1601_vm15 = vmmov %vm1598_vm1 }
  0x46   : > { %v1207_v61 = vmax.f32 %v685_v33, %v391_v53  ;;  %v388_v62 = vmax.f32 %v286_v59, %v350_v60  ;;  %v329_v7 = vrot.slane %v1193_v55, 1  ;;  %v1223_v11 = vmax.f32 %v683_v25, %v389_v63  ;;  %vm1602_vm2 = vmmov %vm1598_vm1 }
  0x47   : > { %v281_v12 = vsel %vm272_vm0, %v262_v56, %v263_v3  ;;  %v346_v15 = vsel %vm1602_vm2, %v327_v42, %v328_v6  ;;  %vm1234_vm6 = vcmp.eq.s32.totalorder %v151_v40, 30  ;;  %vm182_vm3 = vcmp.eq.s32.totalorder %v150_v36, 40  ;;  %vm1605_vm11 = vmmov %vm1598_vm1 }
  0x48   : > { %v1218_v9 = vpack.i.bf16 %v1207_v61, %v1195_v57  ;;  %v1221_v10 = vmax.f32 %v1176_v47, %v388_v62  ;;  %v345_v14 = vsel %vm1601_vm15, %v328_v6, %v329_v7  ;;  %v392_v18 = vmax.f32 %v282_v5, %v346_v15  ;;  %vm198_vm10 = vmor %vm1212_vm14, %vm182_vm3 }
  0x49   : > { %v393_v19 = vmax.f32 %v281_v12, %v345_v14  ;;  %vm183_vm7 = vcmp.eq.s32.totalorder %v151_v40, 40  ;;  %v689_v20 = vsel %vm198_vm10, 1.0, %v934_v24  ;;  %v264_v21 = vrot.slane %v1193_v55, 7  ;;  %vm1606_vm12 = vmmov %vm1598_vm1 }
  0x4a   : > { %763 = vrot.lane.b32.xlu1 %v1218_v9, %s935_s17  ;;  %v1242_v17 = vpack.i.bf16 %v1223_v11, %v1221_v10  ;;  %vm199_vm4 = vmor %vm1234_vm6, %vm183_vm7  ;;  %v152_v22 = vunpack.c.3.s8 %v1070_v4  ;;  %v153_v23 = vunpack.c.0.s8 %v1228_v13  ;;  %v1254_v25 = vmax.f32 %v686_v37, %v392_v18 }
  0x4b   : > { %v1256_v26 = vmax.f32 %v687_v54, %v393_v19  ;;  %v690_v27 = vsel %vm199_vm4, 1.0, %v934_v24  ;;  %v265_v28 = vrot.slane %v689_v20, 7  ;;  %v280_v29 = vsel %vm272_vm0, %v263_v3, %v264_v21  ;;  %vm1607_vm15 = vmmov %vm1602_vm2 }
  0x4c   : > { %758 = vrot.lane.b32.xlu0 %v1242_v17, %s935_s17  ;;  %v330_v30 = vrot.slane %v689_v20, 1  ;;  %v331_v31 = vrot.slane %v690_v27, 1  ;;  %vm168_vm5 = vcmp.eq.s32.totalorder %v152_v22, 30  ;;  %vm169_vm8 = vcmp.eq.s32.totalorder %v153_v23, 30  ;;  %vm1608_vm3 = vmmov %vm1605_vm11 }
  0x4d   : > { %v1263_v4 = vpack.i.bf16 %v1256_v26, %v1254_v25  ;;  %v279_v32 = vsel %vm272_vm0, %v264_v21, %v265_v28  ;;  %vm184_vm9 = vcmp.eq.s32.totalorder %v152_v22, 40  ;;  %vm185_vm13 = vcmp.eq.s32.totalorder %v153_v23, 40 }
  0x4e   : > { %v343_v33 = vsel %vm1605_vm11, %v330_v30, %v331_v31  ;;  %v344_v34 = vsel %vm1606_vm12, %v329_v7, %v330_v30  ;;  %vm200_vm1 = vmor %vm168_vm5, %vm184_vm9  ;;  %v266_v35 = vrot.slane %v690_v27, 7  ;;  %v154_v39 = vunpack.c.1.s8 %v1228_v13 }
  0x4f   : > { %768 = vrot.lane.b32.xlu1 %v1263_v4, %s935_s17  ;;  %v394_v36 = vmax.f32 %v280_v29, %v344_v34  ;;  %v395_v37 = vmax.f32 %v279_v32, %v343_v33  ;;  %vm201_vm14 = vmor %vm169_vm8, %vm185_vm13  ;;  %v691_v38 = vsel %vm200_vm1, 1.0, %v934_v24  ;;  %v155_v50 = vunpack.c.2.s8 %v1228_v13 }
  0x50   : > { %v692_v40 = vsel %vm201_vm14, 1.0, %v934_v24  ;;  %v267_v41 = vrot.slane %v691_v38, 7  ;;  %v278_v42 = vsel %vm272_vm0, %v265_v28, %v266_v35  ;;  %v332_v44 = vrot.slane %v691_v38, 1  ;;  %vm1609_vm8 = vmmov %vm1608_vm3 }
  0x51   : > { %v1279_v45 = vmax.f32 %v1193_v55, %v394_v36  ;;  %v1281_v46 = vmax.f32 %v689_v20, %v395_v37  ;;  %v333_v49 = vrot.slane %v692_v40, 1  ;;  %vm170_vm2 = vcmp.eq.s32.totalorder %v154_v39, 30  ;;  %vm1610_vm9 = vmmov %vm1608_vm3 }
  0x52   : > { %v277_v51 = vsel %vm272_vm0, %v266_v35, %v267_v41  ;;  %v342_v53 = vsel %vm1607_vm15, %v331_v31, %v332_v44  ;;  %vm186_vm6 = vcmp.eq.s32.totalorder %v154_v39, 40  ;;  %vm171_vm7 = vcmp.eq.s32.totalorder %v155_v50, 30 }
  0x53   : > { %v1290_v54 = vpack.i.bf16 %v1281_v46, %v1279_v45  ;;  %v341_v55 = vsel %vm1608_vm3, %v332_v44, %v333_v49  ;;  %v396_v56 = vmax.f32 %v278_v42, %v342_v53  ;;  %vm202_vm10 = vmor %vm170_vm2, %vm186_vm6  ;;  %vm187_vm4 = vcmp.eq.s32.totalorder %v155_v50, 40 }
  0x54   : > { %v397_v58 = vmax.f32 %v277_v51, %v341_v55  ;;  %v693_v59 = vsel %vm202_vm10, 1.0, %v934_v24  ;;  %v268_v60 = vrot.slane %v692_v40, 7  ;;  %vm203_vm5 = vmor %vm171_vm7, %vm187_vm4  ;;  %v141_v18 = vunpack.c.0.s8 %v1064_v2 }
  0x55   : > { %773 = vrot.lane.b32.xlu0 %v1290_v54, %s935_s17  ;;  %v1297_v62 = vmax.f32 %v690_v27, %v396_v56  ;;  %v269_v63 = vrot.slane %v693_v59, 7  ;;  %v334_v3 = vrot.slane %v693_v59, 1  ;;  %v694_v6 = vsel %vm203_vm5, 1.0, %v934_v24  ;;  %vm1611_vm2 = vmmov %vm1608_vm3 }
  0x56   : > { %v1299_v5 = vmax.f32 %v691_v38, %v397_v58  ;;  %v276_v7 = vsel %vm272_vm0, %v267_v41, %v268_v60  ;;  %v335_v12 = vrot.slane %v694_v6, 1  ;;  %v156_v19 = vunpack.c.3.s8 %v1228_v13  ;;  %vm1612_vm3 = vmmov %vm1611_vm2 }
  0x57   : > { %v275_v8 = vsel %vm272_vm0, %v268_v60, %v269_v63  ;;  %v340_v14 = vsel %vm1609_vm8, %v333_v49, %v334_v3  ;;  %v322_v21 = vrot.slane %v1167_v43, 1  ;;  %vm157_vm11 = vcmp.eq.s32.totalorder %v141_v18, 30  ;;  %vm1613_vm10 = vmmov %vm1611_vm2 }
  0x58   : > { %v777_v15 = vpack.i.bf16 %v1299_v5, %v1297_v62  ;;  %v398_v16 = vmax.f32 %v276_v7, %v340_v14  ;;  %v339_v20 = vsel %vm1610_vm9, %v334_v3, %v335_v12  ;;  %vm172_vm12 = vcmp.eq.s32.totalorder %v156_v19, 30  ;;  %vm1614_vm4 = vmmov %vm1611_vm2 }
  0x59   : > { %v399_v22 = vmax.f32 %v275_v8, %v339_v20  ;;  %vm173_vm13 = vcmp.eq.s32.totalorder %v141_v18, 40  ;;  %vm188_vm1 = vcmp.eq.s32.totalorder %v156_v19, 40  ;;  %v270_v27 = vrot.slane %v694_v6, 7 }
  0x5a   : > { %778 = vrot.lane.b32.xlu1 %v777_v15, %s935_s17  ;;  %v1316_v23 = vmax.f32 %v692_v40, %v398_v16  ;;  %vm189_vm14 = vmor %vm157_vm11, %vm173_vm13  ;;  %v253_v2 = vadd.s32 120, %v1061_v1  ;;  %v351_v29 = vsel %vm1611_vm2, %v322_v21, %v323_v52  ;;  %vm289_vm6 = vcmp.ge.s32.totalorder %v1061_v1, 1 }
  0x5b   : > { %v1318_v28 = vmax.f32 %v693_v59, %v399_v22  ;;  %vm204_vm15 = vmor %vm172_vm12, %vm188_vm1  ;;  %v680_v13 = vsel %vm189_vm14, 1.0, %v934_v24  ;;  %v274_v47 = vsel %vm272_vm0, %v269_v63, %v270_v27  ;;  %v1375_v56 = vand.u32 127, %v237_v0 }
  0x5c   : > { %v695_v31 = vsel %vm204_vm15, 1.0, %v934_v24  ;;  %v256_v32 = vrot.slane %v680_v13, 7  ;;  %v321_v33 = vrot.slane %v680_v13, 1  ;;  %vm369_vm7 = vcmp.lt.s32.totalorder %v253_v2, 127 }
  0x5d   : > { %v782_v30 = vpack.i.bf16 %v1318_v28, %v1316_v23  ;;  %v271_v34 = vrot.slane %v695_v31, 7  ;;  %v336_v35 = vrot.slane %v695_v31, 1  ;;  %vm499_vm5 = vcmp.lt.s32.totalorder %v1375_v56, 127 }
  0x5e   : > { %788 = vrot.lane.b32.xlu1 %v1242_v17, %s936_s25  ;;  %v287_v52 = vsel %vm272_vm0, %v256_v32, %v257_v48  ;;  %v352_v17 = vsel %vm1612_vm3, %v321_v33, %v322_v21 }
  0x5f   : > { %783 = vrot.lane.b32.xlu0 %v782_v30, %s935_s17  ;;  %v288_v24 = vsel %vm272_vm0, %v271_v34, %v256_v32  ;;  %v387_v36 = vmax.f32 %v287_v52, %v351_v29  ;;  %v273_v37 = vsel %vm272_vm0, %v270_v27, %v271_v34  ;;  %v338_v38 = vsel %vm1613_vm10, %v335_v12, %v336_v35 }
  0x60   : > { %v305_v39 = vsel %vm289_vm6, %v288_v24, 0.0  ;;  %v353_v48 = vsel %vm1614_vm4, %v336_v35, %v321_v33  ;;  %v400_v40 = vmax.f32 %v274_v47, %v338_v38  ;;  %vm450_vm0 = vcmp.ge.s32.totalorder %v1375_v56, 1 }
  0x61   : > { %v386_v41 = vmax.f32 %v305_v39, %v352_v17  ;;  %v1352_v42 = vmax.f32 %v1167_v43, %v387_v36  ;;  %v385_v44 = vsel %vm369_vm7, %v353_v48, 0.0 }
  0x62   : > { %798 = vrot.lane.b32.xlu1 %v1263_v4, %s936_s25  ;;  %v401_v49 = vmax.f32 %v273_v37, %v385_v44  ;;  %v1356_v50 = vmax.f32 %v694_v6, %v400_v40 }
  0x63   : > { %793 = vrot.lane.b32.xlu0 %v1218_v9, %s936_s25  ;;  %v1358_v51 = vmax.f32 %v680_v13, %v386_v41 }
  0x64   : > { %v1360_v53 = vmax.f32 %v695_v31, %v401_v49 }
  0x65   : > { %v802_v1 = vpack.i.bf16 %v1352_v42, %v1358_v51 }
  0x66   : > { %v807_v4 = vpack.i.bf16 %v1360_v53, %v1356_v50 }
  0x67   : > { %803 = vrot.lane.b32.xlu0 %v802_v1, %s935_s17 }
  0x68   : > { %808 = vrot.lane.b32.xlu1 %v807_v4, %s935_s17 }
  0x6b   : > { %813 = vrot.lane.b32.xlu0 %v802_v1, %s936_s25 }
  0x6c   : > { %823 = vrot.lane.b32.xlu1 %v777_v15, %s936_s25 }
  0x6f   : > { %818 = vrot.lane.b32.xlu0 %v1290_v54, %s936_s25 }
  0x70   : > { %833 = vrot.lane.b32.xlu1 %v807_v4, %s936_s25 }
  0x73   : > { %828 = vrot.lane.b32.xlu0 %v782_v30, %s936_s25 }
  0xbc   : > { %v764_v43 = vpop.permute.xlu1 %763 }
  0xbd   : > { %v766_v15 = vunpack.i.h.bf16 %v764_v43  ;;  %v765_v16 = vunpack.i.l.bf16 %v764_v43 }
  0xbe   : > { %v759_v9 = vpop.permute.xlu0 %758 }
  0xbf   : > { %v761_v60 = vunpack.i.h.bf16 %v759_v9  ;;  %v760_v3 = vunpack.i.l.bf16 %v759_v9  ;;  %v456_v35 = vsel %vm450_vm0, %v766_v15, 0.0  ;;  %v455_v52 = vsel %vm450_vm0, %v765_v16, 0.0 }
  0xc0   : > { %v937_v15 = vmov 0  }
  0xc1   : > { %v769_v55 = vpop.permute.xlu1 %768  ;;  %v454_v18 = vsel %vm450_vm0, %v761_v60, 0.0  ;;  %v453_v20 = vsel %vm450_vm0, %v760_v3, 0.0 }
  0xc2   : > { %v771_v54 = vunpack.i.h.bf16 %v769_v55  ;;  %v770_v8 = vunpack.i.l.bf16 %v769_v55 }
  0xc4   : > { %v458_v21 = vsel %vm450_vm0, %v771_v54, 0.0  ;;  %v457_v2 = vsel %vm450_vm0, %v770_v8, 0.0 }
  0xc7   : > { %v774_v58 = vpop.permute.xlu0 %773 }
  0xc8   : > { %v776_v13 = vunpack.i.h.bf16 %v774_v58  ;;  %v775_v36 = vunpack.i.l.bf16 %v774_v58 }
  0xca   : > { %v1409_v49 = vsel %vm450_vm0, %v776_v13, 0.0 }
  0xcc   : > { %v779_v59 = vpop.permute.xlu1 %778 }
  0xcd   : > { %v781_v37 = vunpack.i.h.bf16 %v779_v59  ;;  %v780_v1 = vunpack.i.l.bf16 %v779_v59 }
  0xd0   : > { %v789_v63 = vpop.permute.xlu1 %788 }
  0xd1   : > { %v791_v6 = vunpack.i.h.bf16 %v789_v63  ;;  %v790_v7 = vunpack.i.l.bf16 %v789_v63  ;;  %v1379_v12 = vpop.permute.xlu0 %783  ;;  %v461_v63 = vsel %vm450_vm0, %v780_v1, 0.0 }
  0xd2   : > { %v786_v3 = vunpack.i.h.bf16 %v1379_v12  ;;  %v785_v54 = vunpack.i.l.bf16 %v1379_v12 }
  0xd3   : > { %v503_v14 = vsel %vm499_vm5, %v791_v6, 0.0  ;;  %v502_v0 = vsel %vm499_vm5, %v790_v7, 0.0 }
  0xd4   : > { %v799_v19 = vpop.permute.xlu1 %798  ;;  %v518_v29 = vmax.f32 %v453_v20, %v502_v0  ;;  %v519_v30 = vmax.f32 %v454_v18, %v503_v14 }
  0xd5   : > { %v801_v22 = vunpack.i.h.bf16 %v799_v19  ;;  %v800_v27 = vunpack.i.l.bf16 %v799_v19  ;;  %v794_v31 = vpop.permute.xlu0 %793 }
  0xd6   : > { %v796_v32 = vunpack.i.h.bf16 %v794_v31  ;;  %v795_v33 = vunpack.i.l.bf16 %v794_v31  ;;  %v534_v4 = vmax.f32 %v1221_v10, %v518_v29  ;;  %v535_v43 = vmax.f32 %v1223_v11, %v519_v30 }
  0xd7   : > { %v507_v34 = vsel %vm499_vm5, %v801_v22, 0.0  ;;  %v506_v47 = vsel %vm499_vm5, %v800_v27, 0.0 }
  0xd8   : > { %v523_v17 = vmax.f32 %v458_v21, %v507_v34  ;;  %v522_v24 = vmax.f32 %v457_v2, %v506_v47  ;;  %v505_v38 = vsel %vm499_vm5, %v796_v32, 0.0  ;;  %v504_v39 = vsel %vm499_vm5, %v795_v33, 0.0 }
  0xd9   : > { %v521_v48 = vmax.f32 %v456_v35, %v505_v38  ;;  %v520_v40 = vmax.f32 %v455_v52, %v504_v39  ;;  %v804_v9 = vpop.permute.xlu0 %803  ;;  %vm550_vm1 = vcmp.gt.f32.partialorder %v534_v4, 0.0  ;;  %vm551_vm15 = vcmp.gt.f32.partialorder %v535_v43, 0.0 }
  0xda   : > { %v539_v41 = vmax.f32 %v1256_v26, %v523_v17  ;;  %v538_v44 = vmax.f32 %v1254_v25, %v522_v24  ;;  %v809_v60 = vpop.permute.xlu1 %808  ;;  %v1417_v25 = vsel %vm450_vm0, %v775_v36, 0.0  ;;  %v462_v26 = vsel %vm450_vm0, %v781_v37, 0.0  ;;  %vm1463_vm6 = vmpackc.low %vm551_vm15, %vm550_vm1 }
  0xdb   : > { %v537_v55 = vmax.f32 %v1207_v61, %v521_v48  ;;  %v536_v58 = vmax.f32 %v1195_v57, %v520_v40  ;;  %v806_v10 = vunpack.i.h.bf16 %v804_v9  ;;  %v805_v11 = vunpack.i.l.bf16 %v804_v9 }
  0xdc   : > { %vm555_vm8 = vcmp.gt.f32.partialorder %v539_v41, 0.0  ;;  %vm554_vm9 = vcmp.gt.f32.partialorder %v538_v44, 0.0  ;;  %v811_v61 = vunpack.i.h.bf16 %v809_v60  ;;  %v810_v57 = vunpack.i.l.bf16 %v809_v60 }
  0xdd   : > { %vm1421_vm11 = vmpackc.low %vm555_vm8, %vm554_vm9  ;;  %vm553_vm12 = vcmp.gt.f32.partialorder %v537_v55, 0.0  ;;  %vm552_vm13 = vcmp.gt.f32.partialorder %v536_v58, 0.0  ;;  %v814_v6 = vpop.permute.xlu0 %813  ;;  %v452_v7 = vsel %vm450_vm0, %v806_v10, 0.0  ;;  %v451_v18 = vsel %vm450_vm0, %v805_v11, 0.0 }
  0xde   : > { %vm567_vm14 = vmpackc.low %vm553_vm12, %vm552_vm13  ;;  %v816_v8 = vunpack.i.h.bf16 %v814_v6  ;;  %v815_v14 = vunpack.i.l.bf16 %v814_v6  ;;  %v824_v0 = vpop.permute.xlu1 %823  ;;  %v466_v21 = vsel %vm450_vm0, %v811_v61, 0.0  ;;  %v465_v22 = vsel %vm450_vm0, %v810_v57, 0.0 }
  0xdf   : > { %vm569_vm2 = vmpackc.even %vm1421_vm11, %vm567_vm14  ;;  %v826_v19 = vunpack.i.h.bf16 %v824_v0  ;;  %v825_v20 = vunpack.i.l.bf16 %v824_v0 }
  0xe0   : > { %v577_v16 = vsel %vm569_vm2, 16843009, %v937_v15  ;;  %v501_v27 = vsel %vm499_vm5, %v816_v8, 0.0  ;;  %v500_v2 = vsel %vm499_vm5, %v815_v14, 0.0 }
  0xe1   : > { %581 = vst [vmem:[%s1438_s27 + $0x8] sm:$0xff] %v577_v16  ;;  %v516_v13 = vmax.f32 %v451_v18, %v500_v2  ;;  %v517_v29 = vmax.f32 %v452_v7, %v501_v27  ;;  %v511_v30 = vsel %vm499_vm5, %v826_v19, 0.0  ;;  %v510_v31 = vsel %vm499_vm5, %v825_v20, 0.0  ;;  %v819_v32 = vpop.permute.xlu0 %818 }
  0xe2   : > { %v527_v33 = vmax.f32 %v462_v26, %v511_v30  ;;  %v526_v34 = vmax.f32 %v461_v63, %v510_v31  ;;  %v821_v47 = vunpack.i.h.bf16 %v819_v32  ;;  %v820_v35 = vunpack.i.l.bf16 %v819_v32  ;;  %v834_v52 = vpop.permute.xlu1 %833 }
  0xe3   : > { %v532_v17 = vmax.f32 %v1358_v51, %v516_v13  ;;  %v533_v24 = vmax.f32 %v1352_v42, %v517_v29  ;;  %v836_v36 = vunpack.i.h.bf16 %v834_v52  ;;  %v835_v37 = vunpack.i.l.bf16 %v834_v52 }
  0xe4   : > { %v543_v38 = vmax.f32 %v1299_v5, %v527_v33  ;;  %v542_v39 = vmax.f32 %v1297_v62, %v526_v34  ;;  %v509_v48 = vsel %vm499_vm5, %v821_v47, 0.0  ;;  %v508_v40 = vsel %vm499_vm5, %v820_v35, 0.0 }
  0xe5   : > { %vm548_vm3 = vcmp.gt.f32.partialorder %v532_v17, 0.0  ;;  %vm549_vm7 = vcmp.gt.f32.partialorder %v533_v24, 0.0  ;;  %v525_v42 = vmax.f32 %v1409_v49, %v509_v48  ;;  %v524_v5 = vmax.f32 %v1417_v25, %v508_v40  ;;  %v829_v62 = vpop.permute.xlu0 %828 }
  0xe6   : > { %vm564_vm10 = vmpackc.low %vm549_vm7, %vm548_vm3  ;;  %vm559_vm4 = vcmp.gt.f32.partialorder %v543_v38, 0.0  ;;  %vm558_vm8 = vcmp.gt.f32.partialorder %v542_v39, 0.0  ;;  %v515_v51 = vsel %vm499_vm5, %v836_v36, 0.0  ;;  %v514_v44 = vsel %vm499_vm5, %v835_v37, 0.0 }
  0xe7   : > { %vm566_vm9 = vmpackc.even %vm1463_vm6, %vm564_vm10  ;;  %v541_v1 = vmax.f32 %v1281_v46, %v525_v42  ;;  %v540_v49 = vmax.f32 %v1279_v45, %v524_v5  ;;  %v530_v4 = vmax.f32 %v465_v22, %v514_v44  ;;  %v531_v43 = vmax.f32 %v466_v21, %v515_v51 }
  0xe8   : > { %v576_v9 = vsel %vm566_vm9, 16843009, %v937_v15  ;;  %vm1478_vm11 = vmpackc.low %vm559_vm4, %vm558_vm8  ;;  %v831_v58 = vunpack.i.h.bf16 %v829_v62  ;;  %v830_v60 = vunpack.i.l.bf16 %v829_v62  ;;  %v464_v45 = vsel %vm450_vm0, %v786_v3, 0.0 }
  0xe9   : > { %580 = vst [vmem:[%s1438_s27] sm:$0xff] %v576_v9  ;;  %vm557_vm12 = vcmp.gt.f32.partialorder %v541_v1, 0.0  ;;  %vm556_vm13 = vcmp.gt.f32.partialorder %v540_v49, 0.0  ;;  %v546_v25 = vmax.f32 %v1356_v50, %v530_v4  ;;  %v547_v46 = vmax.f32 %v1360_v53, %v531_v43 }
  0xea   : > { %v463_v26 = vsel %vm450_vm0, %v785_v54, 0.0  ;;  %vm570_vm1 = vmpackc.low %vm557_vm12, %vm556_vm13  ;;  %v513_v59 = vsel %vm499_vm5, %v831_v58, 0.0  ;;  %v512_v50 = vsel %vm499_vm5, %v830_v60, 0.0 }
  0xeb   : > { %vm572_vm14 = vmpackc.even %vm1478_vm11, %vm570_vm1  ;;  %vm562_vm15 = vcmp.gt.f32.partialorder %v546_v25, 0.0  ;;  %vm563_vm2 = vcmp.gt.f32.partialorder %v547_v46, 0.0  ;;  %v529_v53 = vmax.f32 %v464_v45, %v513_v59  ;;  %v528_v10 = vmax.f32 %v463_v26, %v512_v50 }
  0xec   : > { %v578_v12 = vsel %vm572_vm14, 16843009, %v937_v15  ;;  %vm574_vm0 = vmpackc.low %vm563_vm2, %vm562_vm15 }
  0xed   : > { %582 = vst [vmem:[%s1438_s27 + $0x10] sm:$0xff] %v578_v12  ;;  %v545_v11 = vmax.f32 %v1318_v28, %v529_v53  ;;  %v544_v61 = vmax.f32 %v1316_v23, %v528_v10 }
  0xef   : > { %vm561_vm5 = vcmp.gt.f32.partialorder %v545_v11, 0.0  ;;  %vm560_vm6 = vcmp.gt.f32.partialorder %v544_v61, 0.0 }
  0xf0   : > { %vm573_vm3 = vmpackc.low %vm561_vm5, %vm560_vm6 }
  0xf1   : > { %vm575_vm7 = vmpackc.even %vm574_vm0, %vm573_vm3 }
  0xf2   : > { %v579_v28 = vsel %vm575_vm7, 16843009, %v937_v15 }
  0xf3   : > { %583 = vst [vmem:[%s1438_s27 + $0x18] sm:$0xff] %v579_v28 }
  0xf4   : > { %878 = shalt.err (!%p875_p10)
}
  0xf5   : > { %s879_s16 = scalar_lea.hbm %s1508_s4, 512  ;;  %s883_s22 = scalar_lea.hbm %s1556_s1, 1024 }
  0xf6   : > { %p880_p0 = scmp.ne.s32.totalorder %s1508_s4, %s879_s16  ;;  %p884_p1 = scmp.lt.s32.totalorder %s1508_s4, %s1556_s1 }
  0xf7   : > { %p885_p3 = scmp.lt.s32.totalorder %s883_s22, %s879_s16 }
  0xf8   : > { %p881_p2 = pnand %p880_p0, %p1621_p12 }
  0xf9   : > { %p886_p6 = por %p885_p3, %p884_p1 }
  0xfa   : > { %p882_p9 = pneg %p881_p2 }
  0xfc   : > { %p887_p11 = pnand %p886_p6, %p882_p9 }
  0xfe   : > { %890 = shalt.err (!%p887_p11)
}
  0xff   : > { %s939_s30 = smov 128   ;;  %s940_s17 = smov 8  }
 0x100   : > { %705 = dma.vmem_to_hbm [thread:$0]  (%p1621_p12), %s1510_s29, 512, %s1508_s4, %s585_s10, %s939_s30, %s939_s30, %s940_s17  }
 0x101 PF: > { %s613_s25 = sand.u32 1, %s917_s6   ;;  %p1622_p13 = scmp.ne.s32.totalorder %s1562_s19, 0 }
 0x102   : > { %p1623_p4 = scmp.ge.s32.totalorder %s929_s9, 2  ;;  %s614_s27 = scalar_lea.sflag [#allocation4], %s613_s25 }
 0x104   : > { %p712_p5 = pnand %p1623_p4, %p1622_p13 }
 0x106   : > { %p713_p7 = pneg %p712_p5 }
 0x108   : > { %912 = dma.done.wait (%p713_p7), %s614_s27, 512  }
 0x109   : > { %914 = vsyncadd (%p713_p7), %s614_s27, 4294966784  ;;  %p14_p8 = scmp.ge.s32.totalorder %s976_s12, 4   ;;  %s1624_s6 = smov %s921_s7 }
 0x10a   : > { %s1625_s7 = smov %s925_s8  ;;  %s1626_s8 = smov %s988_s15 }
 0x10b   : > { %s1627_s9 = smov %s976_s12  ;;  %16 = sbr.rel (!%p14_p8) target bundleno = 5 (0x5), region = 69 }
 0x110   :  { %619 = vsyncpa [#allocation3], 1 }
 0x111   :  { %621 = vsyncpa [#allocation3 + $0x1], 1 }
 0x112   :  { %622 = vsyncpa [#allocation4], 1 }
 0x113   :  { %624 = vsyncpa [#allocation4 + $0x1], 1 }

</bundles_post_ra>
